<compile_context>
chip_gen: v7x
topology: tpu7x:2x2x1
jax: 0.10.0
libtpu: 0.0.40
codegen_flags: <defaults>
</compile_context>

<pallas_src>
import jax
import jax.numpy as jnp
from jax import lax
from jax.experimental import pallas as pl
from jax.experimental.pallas import tpu as pltpu

HIDDEN = 512    # self.mlp = nn.Linear(feat_len, 512)
HEAD_W = 8      # fused head lanes: 0:3 = trans, 3:7 = quat, lane 7 = 0
TM_MAX = 2048   # max rows per tile (amortizes per-step overhead on v5e/v6e)


def _round_up(a, b):
    return (a + b - 1) // b * b


def _pick_tm(n, f_pad):
    # >=2 row tiles when possible (v7x: shard across both TensorCores via the
    # "parallel" axis); large tiles otherwise to amortize ~0.35us/grid-step.
    tm = min(TM_MAX, max(8, _round_up(-(-n // 2), 8)))
    # Keep the double-buffered f32 x tile comfortably inside the default
    # 32 MiB scoped-VMEM budget (leaves room for h, casts, resident weights).
    row_bytes = f_pad * 4 * 2
    cap = max(8, (12 * 1024 * 1024 // row_bytes) // 8 * 8)
    return min(tm, cap)


def mlp5_kernel(x_ref, w1_ref, b1_ref, wh_ref, bh_ref, out_ref):
    # hidden = relu(x @ W1 + b1).  The bf16 (or f32) cast happens here, in
    # VMEM, so the wrapper never materializes a casted copy of x in HBM.
    x = x_ref[...].astype(w1_ref.dtype)
    h = jnp.dot(x, w1_ref[...], preferred_element_type=jnp.float32)
    h = jnp.maximum(h + b1_ref[...], 0.0)

    # Single fused head matmul -> (tm, 8): lanes 0:3 trans pre-act, 3:7 quat
    # pre-act (quat bias [1,0,0,0] already folded into bh), lane 7 exactly 0.
    y = jnp.dot(h.astype(wh_ref.dtype), wh_ref[...],
                preferred_element_type=jnp.float32) + bh_ref[...]

    lane = lax.broadcasted_iota(jnp.int32, y.shape, dimension=1)
    is_trans = lane < 3
    is_quat = jnp.logical_and(lane >= 3, lane < 7)

    # quat L2 norm: mask the sum-of-squares to the quat lanes only.
    q2 = jnp.where(is_quat, y * y, 0.0)
    inv = lax.rsqrt(1e-12 + jnp.sum(q2, axis=-1, keepdims=True))

    out_ref[...] = jnp.where(is_trans, jnp.tanh(y),
                             jnp.where(is_quat, y * inv, 0.0))


def prepare_params(params, *, compute_dtype=jnp.bfloat16):
    """One-time parameter prep (fused head + dtype casts). Call once, reuse."""
    F = params["w1"].shape[0]
    f_pad = _round_up(F, 128)
    w1 = jnp.pad(params["w1"], ((0, f_pad - F), (0, 0))).astype(compute_dtype)
    b1 = params["b1"][None, :].astype(jnp.float32)
    wh = (jnp.zeros((HIDDEN, HEAD_W), jnp.float32)
          .at[:, 0:3].set(params["wt"])
          .at[:, 3:7].set(params["wq"])).astype(compute_dtype)
    bh = (jnp.zeros((1, HEAD_W), jnp.float32)
          .at[0, 0:3].set(params["bt"])
          .at[0, 3:7].set(params["bq"])
          .at[0, 3].add(1.0))          # quat_bias = [1, 0, 0, 0]
    return {"w1": w1, "b1": b1, "wh": wh, "bh": bh,
            "feat_len": F, "feat_pad": f_pad}


def mlp5_forward(feat, prepared):
    """feat: (B, P, F) float32 -> (B, P, 7) float32."""
    B, P, F = feat.shape
    assert F == prepared["feat_len"]
    N = B * P
    f_pad = prepared["feat_pad"]

    x = feat.reshape(N, F)              # view; no data movement
    if f_pad != F:
        # Only when feat_len isn't a multiple of 128 (not the case at F=256).
        x = jnp.pad(x, ((0, 0), (0, f_pad - F)))

    tm = _pick_tm(N, f_pad)

    out = pl.pallas_call(
        mlp5_kernel,
        out_shape=jax.ShapeDtypeStruct((N, HEAD_W), jnp.float32),
        grid_spec=pltpu.PrefetchScalarGridSpec(
            num_scalar_prefetch=0,
            grid=(pl.cdiv(N, tm),),
            in_specs=[
                pl.BlockSpec((tm, f_pad), lambda i: (i, 0)),        # x rows (f32)
                pl.BlockSpec((f_pad, HIDDEN), lambda i: (0, 0)),    # W1 (resident)
                pl.BlockSpec((1, HIDDEN), lambda i: (0, 0)),        # b1
                pl.BlockSpec((HIDDEN, HEAD_W), lambda i: (0, 0)),   # fused head W
                pl.BlockSpec((1, HEAD_W), lambda i: (0, 0)),        # fused head b
            ],
            out_specs=pl.BlockSpec((tm, HEAD_W), lambda i: (i, 0)),
        ),
        compiler_params=pltpu.CompilerParams(
            dimension_semantics=("parallel",),   # shard row tiles on v7x
        ),
    )(x, prepared["w1"], prepared["b1"], prepared["wh"], prepared["bh"])

    return out[:, :7].reshape(B, P, 7)   # cols 0:3 = trans, 3:7 = normalized quat


def init_params(key, feat_len):
    """nn.Linear-style uniform init; quat bias zeroed as in the module __init__."""
    k1, k2, k3, k4, k5, _ = jax.random.split(key, 6)

    def lin(kw, kb, fan_in, fan_out):
        bound = 1.0 / jnp.sqrt(fan_in)
        w = jax.random.uniform(kw, (fan_in, fan_out), jnp.float32, -bound, bound)
        b = jax.random.uniform(kb, (fan_out,), jnp.float32, -bound, bound)
        return w, b

    w1, b1 = lin(k1, k2, feat_len, HIDDEN)
    wt, bt = lin(k3, k4, HIDDEN, 3)
    wq, _ = lin(k5, k5, HIDDEN, 4)
    bq = jnp.zeros((4,), jnp.float32)  # self.quat.bias.data.zero_()
    return {"w1": w1, "b1": b1, "wt": wt, "bt": bt, "wq": wq, "bq": bq}


def mlp5_reference(feat, params):
    h = jnp.maximum(feat @ params["w1"] + params["b1"], 0.0)
    trans = jnp.tanh(h @ params["wt"] + params["bt"])
    quat_bias = jnp.array([[[1.0, 0.0, 0.0, 0.0]]], jnp.float32)
    quat = h @ params["wq"] + params["bq"] + quat_bias
    quat = quat / jnp.sqrt(1e-12 + jnp.sum(quat ** 2, axis=-1, keepdims=True))
    return jnp.concatenate([trans, quat], axis=-1)


if __name__ == "__main__":
    B, P, FEAT_LEN = 2, 8, 256
    key = jax.random.PRNGKey(0)
    kx, kp = jax.random.split(key)
    feat = jax.random.normal(kx, (B, P, FEAT_LEN), jnp.float32)
    params = init_params(kp, FEAT_LEN)

    ref = mlp5_reference(feat, params)

    # 1) f32 mode: tight numerical check of the kernel math.
    prep_f32 = prepare_params(params, compute_dtype=jnp.float32)
    out_f32 = jax.block_until_ready(mlp5_forward(feat, prep_f32))
    assert out_f32.shape == (B, P, 7), out_f32.shape
    assert jnp.allclose(out_f32, ref, atol=1e-5, rtol=1e-5), float(
        jnp.max(jnp.abs(out_f32 - ref)))

    # 2) bf16 mode (fast path on v6e/v7x): weights/activations quantized to
    #    bf16 in-kernel, so compare against f32 reference at relaxed tolerance.
    prep_bf16 = prepare_params(params, compute_dtype=jnp.bfloat16)
    out_bf16 = jax.block_until_ready(mlp5_forward(feat, prep_bf16))
    assert out_bf16.shape == (B, P, 7), out_bf16.shape
    assert jnp.allclose(out_bf16, ref, atol=3e-2, rtol=3e-2), float(
        jnp.max(jnp.abs(out_bf16 - ref)))

    print("KERNEL_OK")
</pallas_src>

<mosaic_0001>
module attributes {stable_mosaic.version = 11 : i64} {
  func.func @mlp5_kernel(%arg0: i32, %arg1: memref<8x256xf32, #tpu.memory_space<vmem>>, %arg2: memref<256x512xf32, #tpu.memory_space<vmem>>, %arg3: memref<1x512xf32, #tpu.memory_space<vmem>>, %arg4: memref<512x8xf32, #tpu.memory_space<vmem>>, %arg5: memref<1x8xf32, #tpu.memory_space<vmem>>, %arg6: memref<8x8xf32, #tpu.memory_space<vmem>>) attributes {dimension_semantics = [#tpu.dimension_semantics<parallel>], iteration_bounds = array<i64: 2>, scalar_prefetch = 0 : i64, scratch_operands = 0 : i64, tpu.core_type = #tpu.core_type<tc>, window_params = [{transform_indices = @transform_0, window_bounds = array<i64: 8, 256>}, {pipeline_mode = #tpu.pipeline_mode<synchronous>, transform_indices = @transform_1, window_bounds = array<i64: 256, 512>}, {pipeline_mode = #tpu.pipeline_mode<synchronous>, transform_indices = @transform_2, window_bounds = array<i64: 1, 512>}, {pipeline_mode = #tpu.pipeline_mode<synchronous>, transform_indices = @transform_3, window_bounds = array<i64: 512, 8>}, {pipeline_mode = #tpu.pipeline_mode<synchronous>, transform_indices = @transform_4, window_bounds = array<i64: 1, 8>}, {transform_indices = @transform_5, window_bounds = array<i64: 8, 8>}]} {
    %c0 = arith.constant 0 : index
    %c0_0 = arith.constant 0 : index
    %0 = vector.load %arg1[%c0, %c0_0] : memref<8x256xf32, #tpu.memory_space<vmem>>, vector<8x256xf32>
    %c0_1 = arith.constant 0 : index
    %c0_2 = arith.constant 0 : index
    %1 = vector.load %arg2[%c0_1, %c0_2] : memref<256x512xf32, #tpu.memory_space<vmem>>, vector<256x512xf32>
    %cst = arith.constant dense<0.000000e+00> : vector<8x512xf32>
    %2 = tpu.matmul %0, %1, %cst {dimension_numbers = #tpu.dot_dimension_numbers<[1], [0], [0], [1], [0, 0, 1, 1], [], []>} : vector<8x256xf32>, vector<256x512xf32>, vector<8x512xf32> -> vector<8x512xf32>
    %c0_3 = arith.constant 0 : index
    %c0_4 = arith.constant 0 : index
    %3 = vector.load %arg3[%c0_3, %c0_4] : memref<1x512xf32, #tpu.memory_space<vmem>>, vector<1x512xf32>
    %4 = vector.broadcast %3 : vector<1x512xf32> to vector<8x512xf32>
    %5 = arith.addf %2, %4 : vector<8x512xf32>
    %cst_5 = arith.constant 0.000000e+00 : f32
    %6 = vector.broadcast %cst_5 : f32 to vector<8x512xf32>
    %7 = arith.maximumf %5, %6 : vector<8x512xf32>
    %c0_6 = arith.constant 0 : index
    %c0_7 = arith.constant 0 : index
    %8 = vector.load %arg4[%c0_6, %c0_7] : memref<512x8xf32, #tpu.memory_space<vmem>>, vector<512x8xf32>
    %cst_8 = arith.constant dense<0.000000e+00> : vector<8x8xf32>
    %9 = tpu.matmul %7, %8, %cst_8 {dimension_numbers = #tpu.dot_dimension_numbers<[1], [0], [0], [1], [0, 0, 1, 1], [], []>} : vector<8x512xf32>, vector<512x8xf32>, vector<8x8xf32> -> vector<8x8xf32>
    %c0_9 = arith.constant 0 : index
    %c0_10 = arith.constant 0 : index
    %10 = vector.load %arg5[%c0_9, %c0_10] : memref<1x8xf32, #tpu.memory_space<vmem>>, vector<1x8xf32>
    %11 = vector.broadcast %10 : vector<1x8xf32> to vector<8x8xf32>
    %12 = arith.addf %9, %11 : vector<8x8xf32>
    %13 = tpu.iota {dimensions = array<i32: 1>} : vector<8x8xi32>
    %c3_i32 = arith.constant 3 : i32
    %14 = vector.broadcast %c3_i32 : i32 to vector<8x8xi32>
    %15 = arith.cmpi slt, %13, %14 : vector<8x8xi32>
    %c3_i32_11 = arith.constant 3 : i32
    %16 = vector.broadcast %c3_i32_11 : i32 to vector<8x8xi32>
    %17 = arith.cmpi sge, %13, %16 : vector<8x8xi32>
    %c7_i32 = arith.constant 7 : i32
    %18 = vector.broadcast %c7_i32 : i32 to vector<8x8xi32>
    %19 = arith.cmpi slt, %13, %18 : vector<8x8xi32>
    %20 = arith.andi %17, %19 : vector<8x8xi1>
    %21 = arith.mulf %12, %12 : vector<8x8xf32>
    %cst_12 = arith.constant 0.000000e+00 : f32
    %22 = vector.broadcast %cst_12 : f32 to vector<8x8xf32>
    %23 = arith.select %20, %21, %22 : vector<8x8xi1>, vector<8x8xf32>
    %cst_13 = arith.constant dense<0.000000e+00> : vector<8xf32>
    %24 = vector.multi_reduction <add>, %23, %cst_13 [1] : vector<8x8xf32> to vector<8xf32>
    %25 = vector.shape_cast %24 : vector<8xf32> to vector<8x1xf32>
    %cst_14 = arith.constant 9.99999996E-13 : f32
    %26 = vector.broadcast %cst_14 : f32 to vector<8x1xf32>
    %27 = arith.addf %26, %25 : vector<8x1xf32>
    %28 = math.rsqrt %27 : vector<8x1xf32>
    %29 = math.tanh %12 : vector<8x8xf32>
    %30 = vector.broadcast %28 : vector<8x1xf32> to vector<8x8xf32>
    %31 = arith.mulf %12, %30 : vector<8x8xf32>
    %cst_15 = arith.constant 0.000000e+00 : f32
    %32 = vector.broadcast %cst_15 : f32 to vector<8x8xf32>
    %33 = arith.select %20, %31, %32 : vector<8x8xi1>, vector<8x8xf32>
    %34 = arith.select %15, %29, %33 : vector<8x8xi1>, vector<8x8xf32>
    %c0_16 = arith.constant 0 : index
    %c0_17 = arith.constant 0 : index
    %35 = vector.load %arg6[%c0_16, %c0_17] : memref<8x8xf32, #tpu.memory_space<vmem>>, vector<8x8xf32>
    tpu.vector_store %arg6[%c0_16, %c0_17], %34 {strides = array<i32>} : memref<8x8xf32, #tpu.memory_space<vmem>>, vector<8x8xf32>,
    return
  }
  func.func @transform_0(%arg0: i32) -> (i32, i32) {
    %c0_i32 = arith.constant 0 : i32
    %c0_i32_0 = arith.constant 0 : i32
    return %arg0, %c0_i32 : i32, i32
  }
  func.func @transform_1(%arg0: i32) -> (i32, i32) {
    %c0_i32 = arith.constant 0 : i32
    %c0_i32_0 = arith.constant 0 : i32
    %c0_i32_1 = arith.constant 0 : i32
    return %c0_i32, %c0_i32_0 : i32, i32
  }
  func.func @transform_2(%arg0: i32) -> (i32, i32) {
    %c0_i32 = arith.constant 0 : i32
    %c0_i32_0 = arith.constant 0 : i32
    %c0_i32_1 = arith.constant 0 : i32
    return %c0_i32, %c0_i32_0 : i32, i32
  }
  func.func @transform_3(%arg0: i32) -> (i32, i32) {
    %c0_i32 = arith.constant 0 : i32
    %c0_i32_0 = arith.constant 0 : i32
    %c0_i32_1 = arith.constant 0 : i32
    return %c0_i32, %c0_i32_0 : i32, i32
  }
  func.func @transform_4(%arg0: i32) -> (i32, i32) {
    %c0_i32 = arith.constant 0 : i32
    %c0_i32_0 = arith.constant 0 : i32
    %c0_i32_1 = arith.constant 0 : i32
    return %c0_i32, %c0_i32_0 : i32, i32
  }
  func.func @transform_5(%arg0: i32) -> (i32, i32) {
    %c0_i32 = arith.constant 0 : i32
    %c0_i32_0 = arith.constant 0 : i32
    return %arg0, %c0_i32 : i32, i32
  }
}

</mosaic_0001>

<bundles_post_ra>
// kernel: tpu_custom_call.1
= control target key start
LH: loop header
LB: loop body
LE: loop exit
PB: predicated region body
PF: predicated region fallthrough
CT: control target
= control target key end

     0   :  { %10 = vsyncpa [#allocation3], 0  ;;  %s1205_s18 = smov 0   ;;  %s1479_s0 = inlined_call_operand.vmem [shape: f32[16,256], index: 0, kind: input, shape index: {}]   ;;  %s1480_s1 = inlined_call_operand.hbm [shape: f32[256,512], index: 1, kind: input, shape index: {}]   ;;  %s1481_s2 = inlined_call_operand.vmem [shape: f32[1,512], index: 2, kind: input, shape index: {}]   ;;  %s1482_s3 = inlined_call_operand.vmem [shape: f32[512,8], index: 3, kind: input, shape index: {}]   ;;  %s1483_s4 = inlined_call_operand.vmem [shape: f32[1,8], index: 4, kind: input, shape index: {}]   ;;  %s1484_s5 = inlined_call_operand.vmem [shape: f32[16,8], index: 5, kind: output, shape index: {}]  }
   0x1 LB: > { %s1211_s19 = sadd.s32 4294967295, %s1170_s18   ;;  %p833_p0 = scmp.ge.s32.totalorder %s1170_s18, 1  ;;  %s1170_s18 = sphi %s1205_s18, %s16_s18  }
   0x2   : > { %p157_p1 = scmp.lt.s32.totalorder %s1170_s18, 3  ;;  %s1172_s20 = smov [#allocation2]  }
   0x3   : > { %s169_s21 = sshll.u32 %s1172_s20, 4  ;;  %p1485_p3 = scmp.eq.s32.totalorder %s1211_s19, 0  ;;  %s170_s21 = int_to_ptr.vmem [resolvable:$true] %s169_s21 }
   0x4   : > { %p1215_p2 = pnand %p833_p0, %p157_p1  ;;  %s1132_s26 = scalar_lea.hbm %s1480_s1, 16384 }
   0x5   : > { %p1133_p6 = scmp.ne.s32.totalorder %s1480_s1, %s1132_s26  ;;  %p1139_p10 = scmp.lt.u32.totalorder %s1132_s26, %s1480_s1 }
   0x6   : > { %s1487_s22 = scalar_select %p1215_p2, 1, 0 }
   0x7   : > { %p1111_p4 = pneg %p1215_p2 }
   0x9   : > { %p1224_p5 = pnand %p1485_p3, %p1111_p4 }
   0xb   : > { %p1134_p7 = pneg %p1224_p5 }
   0xd   : > { %p1135_p8 = pnand %p1134_p7, %p1133_p6 }
   0xf   : > { %p1136_p9 = pneg %p1135_p8 }
  0x11   : > { %p1141_p11 = pnand %p1139_p10, %p1136_p9 }
  0x13   : > { %1144 = shalt.err (!%p1141_p11)
}
  0x14   : > { %s1145_s6 = scalar_lea.vmem %s170_s21, 16384  ;;  %p1153_p1 = scmp.lt.s32.totalorder %s170_s21, %s170_s21 }
  0x15   : > { %p1146_p12 = scmp.ne.s32.totalorder %s170_s21, %s1145_s6  ;;  %p1154_p4 = scmp.lt.s32.totalorder %s1145_s6, %s1145_s6 }
  0x17   : > { %p1148_p13 = pnand %p1146_p12, %p1134_p7  ;;  %p1155_p3 = por %p1154_p4, %p1153_p1 }
  0x19   : > { %p1149_p0 = pneg %p1148_p13 }
  0x1b   : > { %p1156_p2 = pnand %p1155_p3, %p1149_p0 }
  0x1d   : > { %1159 = shalt.err (!%p1156_p2)
}
  0x1e   : > { %s1173_s7 = smov 512   ;;  %s1174_s8 = smov 32  }
  0x1f   : > { %1114 = dma.hbm_to_vmem [thread:$0]  (!%p1224_p5), %s1480_s1, 16384, %s170_s21, [#allocation3], %s1173_s7, %s1173_s7, %s1174_s8  }
  0x20   : > { %p1489_p6 = scmp.ne.s32.totalorder %s1487_s22, 0 }
  0x21   : > { %p1490_p8 = scmp.eq.s32.totalorder (!%p1489_p6), %s1211_s19, 0 }
  0x22   : > { %202 = sbr.rel (%p1489_p6) target bundleno = 711 (0x2c7), region = 40 }
  0x29   : > { %1165 = dma.done.wait (%p1490_p8), [#allocation3], 16384   ;;  %p1491_p7 = pmov %p1490_p8 }
  0x2a   : > { %v241_v0 = vld [vmem:[#allocation2 + $0x8] sm:$0xff]  ;;  %v243_v2 = vld [vmem:[#allocation2 + $0x18] sm:$0xff]  ;;  %v240_v5 = vld [vmem:[#allocation2] sm:$0xff]  ;;  %p229_p2 = scmp.lt.s32.totalorder %s1211_s19, 1  ;;  %vm755_vm3 = vcmask 64512  }
  0x2b   : > { %1167 = vsyncadd (%p1491_p7), [#allocation3], 4294950912  ;;  %v245_v1 = vld [vmem:[#allocation2 + $0x28] sm:$0xff]  ;;  %v247_v4 = vld [vmem:[#allocation2 + $0x38] sm:$0xff] }
  0x2c   : > { %v915_v3 = vpack.c.bf16 %v245_v1, %v241_v0  ;;  %v244_v6 = vld [vmem:[#allocation2 + $0x20] sm:$0xff]  ;;  %v979_v7 = vpack.c.bf16 %v247_v4, %v243_v2  ;;  %v242_v9 = vld [vmem:[#allocation2 + $0x10] sm:$0xff]  ;;  %v249_v11 = vld [vmem:[#allocation2 + $0x48] sm:$0xff]  ;;  %s1495_s19 = smov (!%p229_p2, %s1211_s19), 1 }
  0x2d   : > { %v917_v8 = vpack.c.bf16 %v244_v6, %v240_v5  ;;  %v246_v10 = vld [vmem:[#allocation2 + $0x30] sm:$0xff]  ;;  %v253_v13 = vld [vmem:[#allocation2 + $0x68] sm:$0xff]  ;;  %v251_v14 = vld [vmem:[#allocation2 + $0x58] sm:$0xff]  ;;  %s844_s11 = sshll.u32 %s1495_s19, 4  ;;  %s840_s9 = sshll.u32 %s1495_s19, 3 }
  0x2e   : > { %916 = vmatprep.subr.bf16.mxu0 %v915_v3  ;;  %v981_v12 = vpack.c.bf16 %v246_v10, %v242_v9  ;;  %v255_v15 = vld [vmem:[#allocation2 + $0x78] sm:$0xff]  ;;  %980 = vmatprep.subr.bf16.mxu1 %v979_v7  ;;  %v919_v16 = vpack.c.bf16 %v253_v13, %v249_v11  ;;  %v248_v18 = vld [vmem:[#allocation2 + $0x40] sm:$0xff]  ;;  %v250_v20 = vld [vmem:[#allocation2 + $0x50] sm:$0xff]  ;;  %s1260_s14 = scalar_lea.vmem %s1479_s0, %s844_s11  ;;  %s237_s12 = scalar_lea.vmem %s1484_s5, %s840_s9 }
  0x2f   : > { %918 = vmatpush1.bf16.msra.mxu0 %v917_v8  ;;  %v983_v17 = vpack.c.bf16 %v255_v15, %v251_v14  ;;  %v252_v19 = vld [vmem:[#allocation2 + $0x60] sm:$0xff]  ;;  %v254_v22 = vld [vmem:[#allocation2 + $0x70] sm:$0xff]  ;;  %v257_v23 = vld [vmem:[#allocation2 + $0x88] sm:$0xff] }
  0x30   : > { %982 = vmatpush1.bf16.msra.mxu1 %v981_v12  ;;  %v921_v21 = vpack.c.bf16 %v252_v19, %v248_v18  ;;  %v261_v24 = vld [vmem:[#allocation2 + $0xa8] sm:$0xff]  ;;  %920 = vmatprep.subr.bf16.mxu0 %v919_v16  ;;  %v985_v25 = vpack.c.bf16 %v254_v22, %v250_v20  ;;  %v259_v27 = vld [vmem:[#allocation2 + $0x98] sm:$0xff]  ;;  %v256_v29 = vld [vmem:[#allocation2 + $0x80] sm:$0xff] }
  0x31   : > { %984 = vmatprep.subr.bf16.mxu1 %v983_v17  ;;  %v923_v26 = vpack.c.bf16 %v261_v24, %v257_v23  ;;  %v263_v28 = vld [vmem:[#allocation2 + $0xb8] sm:$0xff]  ;;  %v260_v31 = vld [vmem:[#allocation2 + $0xa0] sm:$0xff]  ;;  %v258_v32 = vld [vmem:[#allocation2 + $0x90] sm:$0xff] }
  0x32   : > { %v987_v30 = vpack.c.bf16 %v263_v28, %v259_v27  ;;  %v262_v33 = vld [vmem:[#allocation2 + $0xb0] sm:$0xff]  ;;  %v925_v34 = vpack.c.bf16 %v260_v31, %v256_v29  ;;  %v265_v35 = vld [vmem:[#allocation2 + $0xc8] sm:$0xff]  ;;  %v267_v37 = vld [vmem:[#allocation2 + $0xd8] sm:$0xff] }
  0x33   : > { %922 = vmatpush1.bf16.msra.mxu0 %v921_v21  ;;  %v269_v36 = vld [vmem:[#allocation2 + $0xe8] sm:$0xff]  ;;  %v989_v38 = vpack.c.bf16 %v262_v33, %v258_v32  ;;  %v271_v40 = vld [vmem:[#allocation2 + $0xf8] sm:$0xff]  ;;  %v264_v41 = vld [vmem:[#allocation2 + $0xc0] sm:$0xff] }
  0x34   : > { %986 = vmatpush1.bf16.msra.mxu1 %v985_v25  ;;  %924 = vmatprep.subr.bf16.mxu0 %v923_v26  ;;  %v927_v39 = vpack.c.bf16 %v269_v36, %v265_v35  ;;  %v268_v42 = vld [vmem:[#allocation2 + $0xe0] sm:$0xff]  ;;  %v991_v43 = vpack.c.bf16 %v271_v40, %v267_v37  ;;  %v266_v44 = vld [vmem:[#allocation2 + $0xd0] sm:$0xff]  ;;  %v273_v46 = vld [vmem:[#allocation2 + $0x108] sm:$0xff] }
  0x35   : > { %988 = vmatprep.subr.bf16.mxu1 %v987_v30  ;;  %v270_v45 = vld [vmem:[#allocation2 + $0xf0] sm:$0xff]  ;;  %v277_v47 = vld [vmem:[#allocation2 + $0x128] sm:$0xff]  ;;  %v275_v48 = vld [vmem:[#allocation2 + $0x118] sm:$0xff]  ;;  %v929_v50 = vpack.c.bf16 %v268_v42, %v264_v41 }
  0x36   : > { %v279_v49 = vld [vmem:[#allocation2 + $0x138] sm:$0xff]  ;;  %v993_v51 = vpack.c.bf16 %v270_v45, %v266_v44  ;;  %v931_v52 = vpack.c.bf16 %v277_v47, %v273_v46  ;;  %v272_v53 = vld [vmem:[#allocation2 + $0x100] sm:$0xff]  ;;  %v274_v55 = vld [vmem:[#allocation2 + $0x110] sm:$0xff] }
  0x37   : > { %926 = vmatpush1.bf16.msra.mxu0 %v925_v34  ;;  %v276_v54 = vld [vmem:[#allocation2 + $0x120] sm:$0xff]  ;;  %v995_v56 = vpack.c.bf16 %v279_v49, %v275_v48  ;;  %v278_v57 = vld [vmem:[#allocation2 + $0x130] sm:$0xff]  ;;  %v281_v58 = vld [vmem:[#allocation2 + $0x148] sm:$0xff] }
  0x38   : > { %990 = vmatpush1.bf16.msra.mxu1 %v989_v38  ;;  %928 = vmatprep.subr.bf16.mxu0 %v927_v39  ;;  %v285_v59 = vld [vmem:[#allocation2 + $0x168] sm:$0xff]  ;;  %v283_v60 = vld [vmem:[#allocation2 + $0x158] sm:$0xff]  ;;  %v933_v62 = vpack.c.bf16 %v276_v54, %v272_v53  ;;  %v997_v63 = vpack.c.bf16 %v278_v57, %v274_v55  ;;  %v280_v1 = vld [vmem:[#allocation2 + $0x140] sm:$0xff] }
  0x39   : > { %992 = vmatprep.subr.bf16.mxu1 %v991_v43  ;;  %v287_v61 = vld [vmem:[#allocation2 + $0x178] sm:$0xff]  ;;  %v935_v0 = vpack.c.bf16 %v285_v59, %v281_v58  ;;  %v284_v2 = vld [vmem:[#allocation2 + $0x160] sm:$0xff]  ;;  %v282_v3 = vld [vmem:[#allocation2 + $0x150] sm:$0xff] }
  0x3a   : > { %v999_v4 = vpack.c.bf16 %v287_v61, %v283_v60  ;;  %v286_v5 = vld [vmem:[#allocation2 + $0x170] sm:$0xff]  ;;  %v289_v6 = vld [vmem:[#allocation2 + $0x188] sm:$0xff]  ;;  %v291_v8 = vld [vmem:[#allocation2 + $0x198] sm:$0xff]  ;;  %v937_v10 = vpack.c.bf16 %v284_v2, %v280_v1 }
  0x3b   : > { %930 = vmatpush1.bf16.msra.mxu0 %v929_v50  ;;  %v293_v7 = vld [vmem:[#allocation2 + $0x1a8] sm:$0xff]  ;;  %v295_v9 = vld [vmem:[#allocation2 + $0x1b8] sm:$0xff]  ;;  %v1001_v11 = vpack.c.bf16 %v286_v5, %v282_v3  ;;  %v288_v13 = vld [vmem:[#allocation2 + $0x180] sm:$0xff] }
  0x3c   : > { %994 = vmatpush1.bf16.msra.mxu1 %v993_v51  ;;  %932 = vmatprep.subr.bf16.mxu0 %v931_v52  ;;  %v939_v12 = vpack.c.bf16 %v293_v7, %v289_v6  ;;  %v292_v14 = vld [vmem:[#allocation2 + $0x1a0] sm:$0xff]  ;;  %v290_v15 = vld [vmem:[#allocation2 + $0x190] sm:$0xff]  ;;  %v1003_v16 = vpack.c.bf16 %v295_v9, %v291_v8  ;;  %v297_v18 = vld [vmem:[#allocation2 + $0x1c8] sm:$0xff] }
  0x3d   : > { %996 = vmatprep.subr.bf16.mxu1 %v995_v56  ;;  %v294_v17 = vld [vmem:[#allocation2 + $0x1b0] sm:$0xff]  ;;  %v301_v19 = vld [vmem:[#allocation2 + $0x1e8] sm:$0xff]  ;;  %v299_v20 = vld [vmem:[#allocation2 + $0x1d8] sm:$0xff]  ;;  %v941_v22 = vpack.c.bf16 %v292_v14, %v288_v13 }
  0x3e   : > { %v303_v21 = vld [vmem:[#allocation2 + $0x1f8] sm:$0xff]  ;;  %v1005_v23 = vpack.c.bf16 %v294_v17, %v290_v15  ;;  %v943_v24 = vpack.c.bf16 %v301_v19, %v297_v18  ;;  %v296_v25 = vld [vmem:[#allocation2 + $0x1c0] sm:$0xff]  ;;  %v298_v27 = vld [vmem:[#allocation2 + $0x1d0] sm:$0xff] }
  0x3f   : > { %934 = vmatpush1.bf16.msra.mxu0 %v933_v62  ;;  %v300_v26 = vld [vmem:[#allocation2 + $0x1e0] sm:$0xff]  ;;  %v1007_v28 = vpack.c.bf16 %v303_v21, %v299_v20  ;;  %v302_v29 = vld [vmem:[#allocation2 + $0x1f0] sm:$0xff]  ;;  %v305_v30 = vld [vmem:[#allocation2 + $0x208] sm:$0xff] }
  0x40   : > { %998 = vmatpush1.bf16.msra.mxu1 %v997_v63  ;;  %936 = vmatprep.subr.bf16.mxu0 %v935_v0  ;;  %v309_v31 = vld [vmem:[#allocation2 + $0x228] sm:$0xff]  ;;  %v307_v32 = vld [vmem:[#allocation2 + $0x218] sm:$0xff]  ;;  %v945_v34 = vpack.c.bf16 %v300_v26, %v296_v25  ;;  %v1009_v35 = vpack.c.bf16 %v302_v29, %v298_v27  ;;  %v304_v37 = vld [vmem:[#allocation2 + $0x200] sm:$0xff] }
  0x41   : > { %1000 = vmatprep.subr.bf16.mxu1 %v999_v4  ;;  %v311_v33 = vld [vmem:[#allocation2 + $0x238] sm:$0xff]  ;;  %v947_v36 = vpack.c.bf16 %v309_v31, %v305_v30  ;;  %v308_v38 = vld [vmem:[#allocation2 + $0x220] sm:$0xff]  ;;  %v306_v39 = vld [vmem:[#allocation2 + $0x210] sm:$0xff] }
  0x42   : > { %v1011_v40 = vpack.c.bf16 %v311_v33, %v307_v32  ;;  %v310_v41 = vld [vmem:[#allocation2 + $0x230] sm:$0xff]  ;;  %v313_v42 = vld [vmem:[#allocation2 + $0x248] sm:$0xff]  ;;  %v315_v44 = vld [vmem:[#allocation2 + $0x258] sm:$0xff]  ;;  %v949_v46 = vpack.c.bf16 %v308_v38, %v304_v37 }
  0x43   : > { %938 = vmatpush1.bf16.msra.mxu0 %v937_v10  ;;  %v317_v43 = vld [vmem:[#allocation2 + $0x268] sm:$0xff]  ;;  %v319_v45 = vld [vmem:[#allocation2 + $0x278] sm:$0xff]  ;;  %v1013_v47 = vpack.c.bf16 %v310_v41, %v306_v39  ;;  %v312_v49 = vld [vmem:[#allocation2 + $0x240] sm:$0xff] }
  0x44   : > { %1002 = vmatpush1.bf16.msra.mxu1 %v1001_v11  ;;  %940 = vmatprep.subr.bf16.mxu0 %v939_v12  ;;  %v951_v48 = vpack.c.bf16 %v317_v43, %v313_v42  ;;  %v316_v50 = vld [vmem:[#allocation2 + $0x260] sm:$0xff]  ;;  %v314_v51 = vld [vmem:[#allocation2 + $0x250] sm:$0xff]  ;;  %v1015_v52 = vpack.c.bf16 %v319_v45, %v315_v44  ;;  %v321_v54 = vld [vmem:[#allocation2 + $0x288] sm:$0xff] }
  0x45   : > { %1004 = vmatprep.subr.bf16.mxu1 %v1003_v16  ;;  %v318_v53 = vld [vmem:[#allocation2 + $0x270] sm:$0xff]  ;;  %v325_v55 = vld [vmem:[#allocation2 + $0x2a8] sm:$0xff]  ;;  %v323_v56 = vld [vmem:[#allocation2 + $0x298] sm:$0xff]  ;;  %v953_v58 = vpack.c.bf16 %v316_v50, %v312_v49 }
  0x46   : > { %v327_v57 = vld [vmem:[#allocation2 + $0x2b8] sm:$0xff]  ;;  %v1017_v59 = vpack.c.bf16 %v318_v53, %v314_v51  ;;  %v955_v60 = vpack.c.bf16 %v325_v55, %v321_v54  ;;  %v320_v61 = vld [vmem:[#allocation2 + $0x280] sm:$0xff]  ;;  %v322_v63 = vld [vmem:[#allocation2 + $0x290] sm:$0xff] }
  0x47   : > { %942 = vmatpush1.bf16.msra.mxu0 %v941_v22  ;;  %v324_v62 = vld [vmem:[#allocation2 + $0x2a0] sm:$0xff]  ;;  %v1019_v0 = vpack.c.bf16 %v327_v57, %v323_v56  ;;  %v326_v1 = vld [vmem:[#allocation2 + $0x2b0] sm:$0xff]  ;;  %v329_v2 = vld [vmem:[#allocation2 + $0x2c8] sm:$0xff] }
  0x48   : > { %1006 = vmatpush1.bf16.msra.mxu1 %v1005_v23  ;;  %944 = vmatprep.subr.bf16.mxu0 %v943_v24  ;;  %v333_v3 = vld [vmem:[#allocation2 + $0x2e8] sm:$0xff]  ;;  %v331_v4 = vld [vmem:[#allocation2 + $0x2d8] sm:$0xff]  ;;  %v957_v6 = vpack.c.bf16 %v324_v62, %v320_v61  ;;  %v328_v7 = vld [vmem:[#allocation2 + $0x2c0] sm:$0xff]  ;;  %v1021_v8 = vpack.c.bf16 %v326_v1, %v322_v63 }
  0x49   : > { %1008 = vmatprep.subr.bf16.mxu1 %v1007_v28  ;;  %v335_v5 = vld [vmem:[#allocation2 + $0x2f8] sm:$0xff]  ;;  %v959_v9 = vpack.c.bf16 %v333_v3, %v329_v2  ;;  %v332_v10 = vld [vmem:[#allocation2 + $0x2e0] sm:$0xff]  ;;  %v330_v11 = vld [vmem:[#allocation2 + $0x2d0] sm:$0xff] }
  0x4a   : > { %v334_v12 = vld [vmem:[#allocation2 + $0x2f0] sm:$0xff]  ;;  %v1023_v13 = vpack.c.bf16 %v335_v5, %v331_v4  ;;  %v337_v14 = vld [vmem:[#allocation2 + $0x308] sm:$0xff]  ;;  %v339_v17 = vld [vmem:[#allocation2 + $0x318] sm:$0xff]  ;;  %v961_v19 = vpack.c.bf16 %v332_v10, %v328_v7 }
  0x4b   : > { %946 = vmatpush1.bf16.msra.mxu0 %v945_v34  ;;  %v341_v15 = vld [vmem:[#allocation2 + $0x328] sm:$0xff]  ;;  %v343_v18 = vld [vmem:[#allocation2 + $0x338] sm:$0xff]  ;;  %v1025_v20 = vpack.c.bf16 %v334_v12, %v330_v11  ;;  %v336_v22 = vld [vmem:[#allocation2 + $0x300] sm:$0xff] }
  0x4c   : > { %1010 = vmatpush1.bf16.msra.mxu1 %v1009_v35  ;;  %948 = vmatprep.subr.bf16.mxu0 %v947_v36  ;;  %v239_v16 = vld [vmem:[%s1260_s14 + $0x8] sm:$0xff]  ;;  %v963_v21 = vpack.c.bf16 %v341_v15, %v337_v14  ;;  %v340_v23 = vld [vmem:[#allocation2 + $0x320] sm:$0xff]  ;;  %v338_v24 = vld [vmem:[#allocation2 + $0x310] sm:$0xff]  ;;  %v1027_v25 = vpack.c.bf16 %v343_v18, %v339_v17 }
  0x4d   : > { %1012 = vmatprep.subr.bf16.mxu1 %v1011_v40  ;;  %454 = vmatprep.mubr.f32.mxu0 %v239_v16  ;;  %v342_v26 = vld [vmem:[#allocation2 + $0x330] sm:$0xff]  ;;  %v345_v27 = vld [vmem:[#allocation2 + $0x348] sm:$0xff]  ;;  %v347_v29 = vld [vmem:[#allocation2 + $0x358] sm:$0xff]  ;;  %v965_v31 = vpack.c.bf16 %v340_v23, %v336_v22 }
  0x4e   : > { %525 = vmatprep.mubr.f32.mxu1 %v239_v16  ;;  %v349_v28 = vld [vmem:[#allocation2 + $0x368] sm:$0xff]  ;;  %v351_v30 = vld [vmem:[#allocation2 + $0x378] sm:$0xff]  ;;  %v1029_v32 = vpack.c.bf16 %v342_v26, %v338_v24  ;;  %v344_v34 = vld [vmem:[#allocation2 + $0x340] sm:$0xff] }
  0x4f   : > { %950 = vmatpush1.bf16.msra.mxu0 %v949_v46  ;;  %v967_v33 = vpack.c.bf16 %v349_v28, %v345_v27  ;;  %v348_v35 = vld [vmem:[#allocation2 + $0x360] sm:$0xff]  ;;  %v346_v36 = vld [vmem:[#allocation2 + $0x350] sm:$0xff]  ;;  %v1031_v37 = vpack.c.bf16 %v351_v30, %v347_v29  ;;  %v353_v39 = vld [vmem:[#allocation2 + $0x388] sm:$0xff] }
  0x50   : > { %1014 = vmatpush1.bf16.msra.mxu1 %v1013_v47  ;;  %952 = vmatprep.subr.bf16.mxu0 %v951_v48  ;;  %v350_v38 = vld [vmem:[#allocation2 + $0x370] sm:$0xff]  ;;  %v357_v40 = vld [vmem:[#allocation2 + $0x3a8] sm:$0xff]  ;;  %v355_v41 = vld [vmem:[#allocation2 + $0x398] sm:$0xff]  ;;  %v969_v43 = vpack.c.bf16 %v348_v35, %v344_v34 }
  0x51   : > { %1016 = vmatprep.subr.bf16.mxu1 %v1015_v52  ;;  %v359_v42 = vld [vmem:[#allocation2 + $0x3b8] sm:$0xff]  ;;  %v1033_v44 = vpack.c.bf16 %v350_v38, %v346_v36  ;;  %v971_v45 = vpack.c.bf16 %v357_v40, %v353_v39  ;;  %v352_v46 = vld [vmem:[#allocation2 + $0x380] sm:$0xff]  ;;  %v354_v48 = vld [vmem:[#allocation2 + $0x390] sm:$0xff] }
  0x52   : > { %v356_v47 = vld [vmem:[#allocation2 + $0x3a0] sm:$0xff]  ;;  %v1035_v49 = vpack.c.bf16 %v359_v42, %v355_v41  ;;  %v358_v50 = vld [vmem:[#allocation2 + $0x3b0] sm:$0xff]  ;;  %v361_v51 = vld [vmem:[#allocation2 + $0x3c8] sm:$0xff] }
  0x53   : > { %954 = vmatpush1.bf16.msra.mxu0 %v953_v58  ;;  %v365_v52 = vld [vmem:[#allocation2 + $0x3e8] sm:$0xff]  ;;  %v363_v53 = vld [vmem:[#allocation2 + $0x3d8] sm:$0xff]  ;;  %v973_v55 = vpack.c.bf16 %v356_v47, %v352_v46  ;;  %v1037_v56 = vpack.c.bf16 %v358_v50, %v354_v48  ;;  %v360_v58 = vld [vmem:[#allocation2 + $0x3c0] sm:$0xff] }
  0x54   : > { %1018 = vmatpush1.bf16.msra.mxu1 %v1017_v59  ;;  %956 = vmatprep.subr.bf16.mxu0 %v955_v60  ;;  %v367_v54 = vld [vmem:[#allocation2 + $0x3f8] sm:$0xff]  ;;  %v975_v57 = vpack.c.bf16 %v365_v52, %v361_v51  ;;  %v364_v59 = vld [vmem:[#allocation2 + $0x3e0] sm:$0xff]  ;;  %v362_v60 = vld [vmem:[#allocation2 + $0x3d0] sm:$0xff] }
  0x55   : > { %1020 = vmatprep.subr.bf16.mxu1 %v1019_v0  ;;  %v1039_v61 = vpack.c.bf16 %v367_v54, %v363_v53  ;;  %v366_v62 = vld [vmem:[#allocation2 + $0x3f0] sm:$0xff]  ;;  %v552_v63 = vld [vmem:[%s1482_s3 + $0x80] sm:$0xff]  ;;  %v553_v0 = vld [vmem:[%s1482_s3 + $0x88] sm:$0xff]  ;;  %v977_v3 = vpack.c.bf16 %v364_v59, %v360_v58 }
  0x56   : > { %v584_v1 = vld [vmem:[%s1482_s3 + $0x180] sm:$0xff]  ;;  %v585_v2 = vld [vmem:[%s1482_s3 + $0x188] sm:$0xff]  ;;  %v1041_v4 = vpack.c.bf16 %v366_v62, %v362_v60  ;;  %v1043_v5 = vpack.c.bf16 %v553_v0, %v552_v63  ;;  %v554_v11 = vld [vmem:[%s1482_s3 + $0x90] sm:$0xff] }
  0x57   : > { %958 = vmatpush1.bf16.msra.mxu0 %v957_v6  ;;  %v536_v6 = vld [vmem:[%s1482_s3] sm:$0xff]  ;;  %v537_v7 = vld [vmem:[%s1482_s3 + $0x8] sm:$0xff]  ;;  %v555_v12 = vld [vmem:[%s1482_s3 + $0x98] sm:$0xff] }
  0x58   : > { %1022 = vmatpush1.bf16.msra.mxu1 %v1021_v8  ;;  %960 = vmatprep.subr.bf16.mxu0 %v959_v9  ;;  %v568_v8 = vld [vmem:[%s1482_s3 + $0x100] sm:$0xff]  ;;  %v1075_v9 = vpack.c.bf16 %v585_v2, %v584_v1  ;;  %v569_v10 = vld [vmem:[%s1482_s3 + $0x108] sm:$0xff]  ;;  %v587_v14 = vld [vmem:[%s1482_s3 + $0x198] sm:$0xff]  ;;  %v1045_v16 = vpack.c.bf16 %v537_v7, %v536_v6  ;;  %v1047_v18 = vpack.c.bf16 %v555_v12, %v554_v11 }
  0x59   : > { %1024 = vmatprep.subr.bf16.mxu1 %v1023_v13  ;;  %v586_v13 = vld [vmem:[%s1482_s3 + $0x190] sm:$0xff]  ;;  %v238_v15 = vld [vmem:[%s1260_s14] sm:$0xff]  ;;  %v1077_v17 = vpack.c.bf16 %v569_v10, %v568_v8  ;;  %v571_v23 = vld [vmem:[%s1482_s3 + $0x118] sm:$0xff] }
  0x5a   : > { %v1079_v22 = vpack.c.bf16 %v587_v14, %v586_v13  ;;  %v556_v24 = vld [vmem:[%s1482_s3 + $0xa0] sm:$0xff]  ;;  %v589_v27 = vld [vmem:[%s1482_s3 + $0x1a8] sm:$0xff]  ;;  %v558_v36 = vld [vmem:[%s1482_s3 + $0xb0] sm:$0xff] }
  0x5b   : > { %962 = vmatpush1.bf16.msra.mxu0 %v961_v19  ;;  %v538_v19 = vld [vmem:[%s1482_s3 + $0x10] sm:$0xff]  ;;  %v588_v26 = vld [vmem:[%s1482_s3 + $0x1a0] sm:$0xff]  ;;  %v573_v35 = vld [vmem:[%s1482_s3 + $0x128] sm:$0xff] }
  0x5c   : > { %1026 = vmatpush1.bf16.msra.mxu1 %v1025_v20  ;;  %964 = vmatprep.subr.bf16.mxu0 %v963_v21  ;;  %v539_v20 = vld [vmem:[%s1482_s3 + $0x18] sm:$0xff]  ;;  %v570_v21 = vld [vmem:[%s1482_s3 + $0x110] sm:$0xff]  ;;  %v1083_v34 = vpack.c.bf16 %v589_v27, %v588_v26  ;;  %v560_v48 = vld [vmem:[%s1482_s3 + $0xc0] sm:$0xff] }
  0x5d   : > { %1028 = vmatprep.subr.bf16.mxu1 %v1027_v25  ;;  %v557_v25 = vld [vmem:[%s1482_s3 + $0xa8] sm:$0xff]  ;;  %v1049_v28 = vpack.c.bf16 %v539_v20, %v538_v19  ;;  %v1081_v29 = vpack.c.bf16 %v571_v23, %v570_v21  ;;  %v590_v38 = vld [vmem:[%s1482_s3 + $0x1b0] sm:$0xff]  ;;  %v591_v39 = vld [vmem:[%s1482_s3 + $0x1b8] sm:$0xff] }
  0x5e   : > { %v1051_v30 = vpack.c.bf16 %v557_v25, %v556_v24  ;;  %v1087_v46 = vpack.c.bf16 %v591_v39, %v590_v38  ;;  %v575_v47 = vld [vmem:[%s1482_s3 + $0x138] sm:$0xff]  ;;  %v592_v50 = vld [vmem:[%s1482_s3 + $0x1c0] sm:$0xff]  ;;  %v593_v51 = vld [vmem:[%s1482_s3 + $0x1c8] sm:$0xff] }
  0x5f   : > { %966 = vmatpush1.bf16.msra.mxu0 %v965_v31  ;;  %v540_v31 = vld [vmem:[%s1482_s3 + $0x20] sm:$0xff]  ;;  %v1091_v58 = vpack.c.bf16 %v593_v51, %v592_v50  ;;  %v577_v59 = vld [vmem:[%s1482_s3 + $0x148] sm:$0xff]  ;;  %v562_v60 = vld [vmem:[%s1482_s3 + $0xd0] sm:$0xff] }
  0x60   : > { %1030 = vmatpush1.bf16.msra.mxu1 %v1029_v32  ;;  %968 = vmatprep.subr.bf16.mxu0 %v967_v33  ;;  %v541_v32 = vld [vmem:[%s1482_s3 + $0x28] sm:$0xff]  ;;  %v572_v33 = vld [vmem:[%s1482_s3 + $0x120] sm:$0xff]  ;;  %v594_v62 = vld [vmem:[%s1482_s3 + $0x1d0] sm:$0xff] }
  0x61   : > { %1032 = vmatprep.subr.bf16.mxu1 %v1031_v37  ;;  %v559_v37 = vld [vmem:[%s1482_s3 + $0xb8] sm:$0xff]  ;;  %v1053_v40 = vpack.c.bf16 %v541_v32, %v540_v31  ;;  %v1085_v41 = vpack.c.bf16 %v573_v35, %v572_v33  ;;  %v564_v8 = vld [vmem:[%s1482_s3 + $0xe0] sm:$0xff]  ;;  %v597_v11 = vld [vmem:[%s1482_s3 + $0x1e8] sm:$0xff] }
  0x62   : > { %v1055_v42 = vpack.c.bf16 %v559_v37, %v558_v36  ;;  %v595_v63 = vld [vmem:[%s1482_s3 + $0x1d8] sm:$0xff]  ;;  %v596_v10 = vld [vmem:[%s1482_s3 + $0x1e0] sm:$0xff]  ;;  %v581_v20 = vld [vmem:[%s1482_s3 + $0x168] sm:$0xff] }
  0x63   : > { %970 = vmatpush1.bf16.msra.mxu0 %v969_v43  ;;  %v542_v43 = vld [vmem:[%s1482_s3 + $0x30] sm:$0xff]  ;;  %v1095_v6 = vpack.c.bf16 %v595_v63, %v594_v62  ;;  %v579_v7 = vld [vmem:[%s1482_s3 + $0x158] sm:$0xff]  ;;  %v368_v37 = vld [vmem:[%s1481_s2] sm:$0xf] }
  0x64   : > { %1034 = vmatpush1.bf16.msra.mxu1 %v1033_v44  ;;  %972 = vmatprep.subr.bf16.mxu0 %v971_v45  ;;  %v543_v44 = vld [vmem:[%s1482_s3 + $0x38] sm:$0xff]  ;;  %v574_v45 = vld [vmem:[%s1482_s3 + $0x130] sm:$0xff] }
  0x65   : > { %1036 = vmatprep.subr.bf16.mxu1 %v1035_v49  ;;  %v561_v49 = vld [vmem:[%s1482_s3 + $0xc8] sm:$0xff]  ;;  %v1057_v52 = vpack.c.bf16 %v543_v44, %v542_v43  ;;  %v1089_v53 = vpack.c.bf16 %v575_v47, %v574_v45  ;;  %v567_v23 = vld [vmem:[%s1482_s3 + $0xf8] sm:$0xff]  ;;  %v598_v24 = vld [vmem:[%s1482_s3 + $0x1f0] sm:$0xff] }
  0x66   : > { %v1059_v54 = vpack.c.bf16 %v561_v49, %v560_v48  ;;  %v599_v26 = vld [vmem:[%s1482_s3 + $0x1f8] sm:$0xff]  ;;  %v550_v27 = vld [vmem:[%s1482_s3 + $0x70] sm:$0xff] }
  0x67   : > { %974 = vmatpush1.bf16.msra.mxu0 %v973_v55  ;;  %v544_v55 = vld [vmem:[%s1482_s3 + $0x40] sm:$0xff]  ;;  %v582_v31 = vld [vmem:[%s1482_s3 + $0x170] sm:$0xff]  ;;  %v583_v32 = vld [vmem:[%s1482_s3 + $0x178] sm:$0xff] }
  0x68   : > { %1038 = vmatpush1.bf16.msra.mxu1 %v1037_v56  ;;  %976 = vmatprep.subr.bf16.mxu0 %v975_v57  ;;  %v545_v56 = vld [vmem:[%s1482_s3 + $0x48] sm:$0xff]  ;;  %v576_v57 = vld [vmem:[%s1482_s3 + $0x140] sm:$0xff]  ;;  %v1105_v33 = vpack.c.bf16 %v583_v32, %v582_v31 }
  0x69   : > { %1040 = vmatprep.subr.bf16.mxu1 %v1039_v61  ;;  %v563_v61 = vld [vmem:[%s1482_s3 + $0xd8] sm:$0xff]  ;;  %v1061_v0 = vpack.c.bf16 %v545_v56, %v544_v55  ;;  %v1093_v1 = vpack.c.bf16 %v577_v59, %v576_v57 }
  0x6a   : > { %v1063_v2 = vpack.c.bf16 %v563_v61, %v562_v60  ;;  %v841_v60 = vld [vmem:[%s1483_s4] ss:$0 sm:$0xff] }
  0x6b   : > { %978 = vmatpush1.bf16.msra.mxu0 %v977_v3  ;;  %v546_v3 = vld [vmem:[%s1482_s3 + $0x50] sm:$0xff] }
  0x6c   : > { %1042 = vmatpush1.bf16.msra.mxu1 %v1041_v4  ;;  %1044 = vmatprep.subr.bf16.mxu0 %v1043_v5  ;;  %v547_v4 = vld [vmem:[%s1482_s3 + $0x58] sm:$0xff]  ;;  %v578_v5 = vld [vmem:[%s1482_s3 + $0x150] sm:$0xff] }
  0x6d   : > { %1076 = vmatprep.subr.bf16.mxu1 %v1075_v9  ;;  %v565_v9 = vld [vmem:[%s1482_s3 + $0xe8] sm:$0xff]  ;;  %v1065_v12 = vpack.c.bf16 %v547_v4, %v546_v3  ;;  %v1097_v13 = vpack.c.bf16 %v579_v7, %v578_v5 }
  0x6e   : > { %455 = vmatmul.mubr.f32.vlgmr.msra.gmra.mrb[0].mxu0 %v238_v15  ;;  %v1067_v14 = vpack.c.bf16 %v565_v9, %v564_v8 }
  0x6f   : > { %526 = vmatmul.mubr.f32.vlgmr.msra.gmra.mrb[0].mxu1 %v238_v15  ;;  %1046 = vmatpush3.bf16.msra.mxu0 %v1045_v16  ;;  %v1099_v15 = vpack.c.bf16 %v597_v11, %v596_v10  ;;  %v548_v16 = vld [vmem:[%s1482_s3 + $0x60] sm:$0xff] }
  0x70   : > { %1078 = vmatpush3.bf16.msra.mxu1 %v1077_v17  ;;  %1048 = vmatprep.subr.bf16.mxu0 %v1047_v18  ;;  %v549_v17 = vld [vmem:[%s1482_s3 + $0x68] sm:$0xff]  ;;  %v580_v18 = vld [vmem:[%s1482_s3 + $0x160] sm:$0xff] }
  0x71   : > { %1080 = vmatprep.subr.bf16.mxu1 %v1079_v22  ;;  %v1069_v19 = vpack.c.bf16 %v549_v17, %v548_v16  ;;  %v1101_v21 = vpack.c.bf16 %v581_v20, %v580_v18  ;;  %v566_v22 = vld [vmem:[%s1482_s3 + $0xf0] sm:$0xff] }
  0x72   : > { %v1071_v25 = vpack.c.bf16 %v567_v23, %v566_v22 }
  0x73   : > { %1050 = vmatpush3.bf16.msra.mxu0 %v1049_v28  ;;  %v551_v28 = vld [vmem:[%s1482_s3 + $0x78] sm:$0xff] }
  0x74   : > { %1082 = vmatpush3.bf16.msra.mxu1 %v1081_v29  ;;  %1052 = vmatprep.subr.bf16.mxu0 %v1051_v30  ;;  %v1103_v29 = vpack.c.bf16 %v599_v26, %v598_v24  ;;  %v1073_v30 = vpack.c.bf16 %v551_v28, %v550_v27 }
  0x75   : > { %1084 = vmatprep.subr.bf16.mxu1 %v1083_v34  ;;  %v370_v34 = vlaneseq }
  0x77   : > { %1054 = vmatpush3.bf16.msra.mxu0 %v1053_v40  ;;  %v371_v35 = vshrl.u32 %v370_v34, 7 }
  0x78   : > { %1086 = vmatpush3.bf16.msra.mxu1 %v1085_v41  ;;  %1056 = vmatprep.subr.bf16.mxu0 %v1055_v42 }
  0x79   : > { %1088 = vmatprep.subr.bf16.mxu1 %v1087_v46  ;;  %v372_v36 = vsub.s32 0, %v371_v35  ;;  %v380_v38 = vsub.s32 2, %v371_v35  ;;  %v376_v39 = vsub.s32 1, %v371_v35  ;;  %v384_v40 = vsub.s32 3, %v371_v35 }
  0x7b   : > { %1058 = vmatpush3.bf16.msra.mxu0 %v1057_v52  ;;  %v373_v41 = vrot.slane %v368_v37, %v372_v36  ;;  %v381_v42 = vrot.slane %v368_v37, %v380_v38  ;;  %v377_v43 = vrot.slane %v368_v37, %v376_v39  ;;  %v385_v44 = vrot.slane %v368_v37, %v384_v40 }
  0x7c   : > { %1090 = vmatpush3.bf16.msra.mxu1 %v1089_v53  ;;  %1060 = vmatprep.subr.bf16.mxu0 %v1059_v54 }
  0x7d   : > { %1092 = vmatprep.subr.bf16.mxu1 %v1091_v58  ;;  %v748_v58 = vand.u32 127, %v370_v34 }
  0x7f   : > { %1062 = vmatpush3.bf16.msra.mxu0 %v1061_v0  ;;  %vm750_vm0 = vcmp.ge.s32.totalorder %v748_v58, 3  ;;  %vm751_vm1 = vcmp.lt.s32.totalorder %v748_v58, 7  ;;  %vm749_vm4 = vcmp.lt.s32.totalorder %v748_v58, 3 }
  0x80   : > { %1094 = vmatpush3.bf16.msra.mxu1 %v1093_v1  ;;  %1064 = vmatprep.subr.bf16.mxu0 %v1063_v2  ;;  %vm1462_vm2 = vmand %vm750_vm0, %vm751_vm1 }
  0x81   : > { %1096 = vmatprep.subr.bf16.mxu1 %v1095_v6 }
  0x83   : > { %1066 = vmatpush3.bf16.msra.mxu0 %v1065_v12 }
  0x84   : > { %1098 = vmatpush3.bf16.msra.mxu1 %v1097_v13  ;;  %1068 = vmatprep.subr.bf16.mxu0 %v1067_v14 }
  0x85   : > { %1100 = vmatprep.subr.bf16.mxu1 %v1099_v15 }
  0x87   : > { %1070 = vmatpush3.bf16.msra.mxu0 %v1069_v19 }
  0x88   : > { %1102 = vmatpush3.bf16.msra.mxu1 %v1101_v21  ;;  %1072 = vmatprep.subr.bf16.mxu0 %v1071_v25 }
  0x89   : > { %1104 = vmatprep.subr.bf16.mxu1 %v1103_v29 }
  0x8b   : > { %1074 = vmatpush3.bf16.msra.mxu0 %v1073_v30 }
  0x8c   : > { %1106 = vmatpush3.bf16.msra.mxu1 %v1105_v33 }
 0x141   : > { %v456_v45 = vpop.f32.mrb[0].mxu0 }
 0x142   : > { %v457_v46 = vadd.f32 %v456_v45, %v373_v41  ;;  %v527_v47 = vpop.f32.mrb[0].mxu1  ;;  %v458_v48 = vpop.f32.mrb[1].mxu0 }
 0x143   : > { %v528_v49 = vadd.f32 %v527_v47, %v381_v42  ;;  %v459_v50 = vadd.f32 %v458_v48, %v377_v43  ;;  %v529_v51 = vpop.f32.mrb[1].mxu1 }
 0x144   : > { %v530_v52 = vadd.f32 %v529_v51, %v385_v44  ;;  %v532_v55 = vmax.f32 %v457_v46, 0.0 }
 0x145   : > { %v534_v53 = vmax.f32 %v528_v49, 0.0  ;;  %v533_v54 = vmax.f32 %v459_v50, 0.0 }
 0x146   : > { %v535_v56 = vmax.f32 %v530_v52, 0.0 }
 0x147   : > { %671 = vmatprep.mubr.f32.mxu0 %v533_v54 }
 0x148   : > { %741 = vmatprep.mubr.f32.mxu1 %v535_v56  ;;  %672 = vmatmul.mubr.f32.vlgmr.msra.gmra.mrb[2].mxu0 %v532_v55 }
 0x149   : > { %742 = vmatmul.mubr.f32.vlgmr.msra.gmra.mrb[2].mxu1 %v534_v53 }
 0x21b   : > { %v877_v57 = vpop.f32.mrb[2].mxu0 }
 0x21c   : > { %v912_v59 = vpop.f32.mrb[2].mxu1  ;;  %v878_v61 = vpop.f32.mrb[3].mxu0 }
 0x21d   : > { %v879_v62 = vadd.f32 %v878_v61, %v877_v57  ;;  %v913_v63 = vpop.f32.mrb[3].mxu1 }
 0x21e   : > { %v914_v0 = vadd.f32 %v913_v63, %v912_v59 }
 0x21f   : > { %v674_v1 = vadd.f32 %v879_v62, %v841_v60 }
 0x221   : > { %v744_v2 = vadd.f32 %v914_v0, %v674_v1 }
 0x223   : > { %v753_v4 = vmul.f32 %v744_v2, %v744_v2 }
 0x225   : > { %v754_v5 = vsel %vm1462_vm2, %v753_v4, 0.0 }
 0x226   : > { %v756_v6 = vsel %vm755_vm3, %v754_v5, 0.0 }
 0x227   : > { %757 = vadd.xlane.f32.xlu0 %v756_v6 }
 0x2b4   : > { %v758_v7 = vpop.xlane.xlu0 %757 }
 0x2b5   : > { %v759_v8 = vadd.f32 1e-12, %v758_v7 }
 0x2b7   : > { %1128 = vrsqrt.f32 %v759_v8 }
 0x2b8   : > { %1130 = vtanh.f32 %v744_v2 }
 0x2c1   : > { %v1129_v9 = vpop.eup %1128 }
 0x2c2   : > { %v762_v10 = vmul.f32 %v1129_v9, %v744_v2  ;;  %v1131_v11 = vpop.eup %1130 }
 0x2c4   : > { %v763_v12 = vsel %vm1462_vm2, %v762_v10, 0.0 }
 0x2c5   : > { %v764_v13 = vsel %vm749_vm4, %v1131_v11, %v763_v12 }
 0x2c6   : > { %765 = vst.msk [vmem:[%s237_s12] sm:$0xff] %vm755_vm3, %v764_v13 }
 0x2c7 PF: > { %s16_s18 = sadd.s32 1, %s1170_s18  }
 0x2c8   : > { %p13_p3 = scmp.ge.s32.totalorder %s16_s18, 4  }
 0x2ca   :  { %15 = sbr.rel (!%p13_p3) target bundleno = 1 (0x1), region = 75 }
 0x2d1   :  { %785 = vsyncpa [#allocation3], 1 }
 0x2d2   :  { %787 = vsyncpa [#allocation3 + $0x1], 1 }

</bundles_post_ra>
